<compile_context>
chip_gen: v5e
topology: v5e:2x2
jax: 0.10.0
libtpu: 0.0.40
codegen_flags: <defaults>
</compile_context>

<pallas_src>
import jax
import jax.numpy as jnp
import numpy as np
from jax.experimental import pallas as pl
from jax.experimental.pallas import tpu as pltpu


def _cdiv(a, b):
    return -(-a // b)


# ----------------------------------------------------------------------------- masks
def _build_masks(h_pad, w, k1, k2, pad_t, pad_l, oh, ow, out_h, out_w):
    """0/1 banded box-filter operands with replicate-pad folded in (numpy, host)."""
    ri = np.arange(out_h)[:, None]
    rj = np.arange(h_pad)[None, :]
    rlo = np.clip(ri - pad_t, 0, oh - 1)
    ah = ((rj >= rlo) & (rj < rlo + k1)).astype(np.float32)        # (out_h, h_pad)

    cj = np.arange(w)[:, None]
    ci = np.arange(out_w)[None, :]
    clo = np.clip(ci - pad_l, 0, ow - 1)
    cw = ((cj >= clo) & (cj < clo + k2)).astype(np.float32)        # (w, out_w)
    return ah, cw


# ----------------------------------------------------------------------------- kernel
def _make_kernel(b, h_pad, w, out_h, out_w, inv_area, dtype, fused):
    def kernel(x_ref, ah_ref, cw_ref, o_ref):
        # ---- W pass: one big MXU matmul over all b planes (native dtype) ----
        x2 = x_ref[...].reshape(b * h_pad, w)                       # free view (h_pad aligned)
        y = jnp.dot(x2, cw_ref[...],
                    preferred_element_type=jnp.float32)             # (b*h_pad, out_w) f32

        if fused:
            # ---- H pass as ONE large matmul: (b*out_w, h_pad) @ (h_pad, out_h) ----
            # ah_ref holds Ah^T (h_pad, out_h); it is the stationary RHS operand.
            y3 = y.reshape(b, h_pad, out_w)                         # free (h_pad % 8 == 0)
            yt = jnp.swapaxes(y3, -1, -2)                           # (b, out_w, h_pad)  XLU
            lhs = yt.reshape(b * out_w, h_pad)                      # free (out_w % 8 == 0)
            if dtype != jnp.float32:
                lhs = lhs.astype(dtype)                             # native bf16 MXU path
            zt = jnp.dot(lhs, ah_ref[...],
                         preferred_element_type=jnp.float32)        # (b*out_w, out_h) f32
            zt = zt * jnp.float32(inv_area)                         # single trailing VPU scale
            z = jnp.swapaxes(zt.reshape(b, out_w, out_h), -1, -2)   # (b, out_h, out_w)
        else:
            # Fallback (out_w not sublane-aligned, e.g. global pool with out_w == 1):
            # proven batched-einsum path.
            y3 = y.reshape(b, h_pad, out_w)
            ab = jnp.broadcast_to(ah_ref[...][None].astype(jnp.float32),
                                  (b, out_h, h_pad))
            z = jnp.einsum("boh,bhw->bow", ab, y3,
                           preferred_element_type=jnp.float32) * jnp.float32(inv_area)

        o_ref[...] = z.astype(dtype)

    return kernel


# ------------------------------------------------------------------- VMEM / grid sizing
def _vmem_budget():
    cap = 64 << 20                       # conservative default: v7x per-TC VMEM
    try:
        cap = int(pltpu.get_tpu_info().vmem_capacity_bytes)
    except Exception:
        pass
    vmem_limit = max(32 << 20, min(cap - (16 << 20), 100 << 20))
    budget = max(16 << 20, cap // 2 - (4 << 20))
    budget = min(budget, vmem_limit - (8 << 20))
    return budget, vmem_limit


def _choose_grid(nc, h_pad, w, out_h, out_w, itemsize, budget_bytes):
    """Pick plane-batch b and an even number (>=2) of grid steps; pad nc to steps*b."""
    per_plane = (
        2 * h_pad * w * itemsize                 # double-buffered input block
        + 2 * out_h * out_w * itemsize           # double-buffered output block
        + 4 * (2 * h_pad * out_w                 # y + its transposed copy (f32)
               + 2 * out_w * out_h               # zt + transposed copy (f32)
               + out_h * out_w)                  # final cast staging
        + h_pad * w * itemsize                   # possible relayout copy of x2
    )
    fixed = 2 * itemsize * (h_pad * out_h + w * out_w)   # resident mask operands
    b_max = max(1, (budget_bytes - fixed) // max(per_plane, 1))

    steps = max(2, _cdiv(nc, b_max))     # >= 2 steps so both v7x TCs get work
    steps += steps % 2                   # even split across the 2 TCs
    b = _cdiv(nc, steps)
    nc_pad = steps * b
    return b, steps, nc_pad


# ----------------------------------------------------------------------------- wrapper
def avg_pool2d_pallas(x, kernel_size, auto_pad=True):
    """Pallas equivalent of nafnet AvgPool2d.forward (fast_imp=False path)."""
    n, c, h, w = x.shape
    ks0, ks1 = kernel_size

    k1 = min(h, ks0)
    k2 = min(w, ks1)
    oh = h + 1 - k1
    ow = w + 1 - k2

    # Reference early-returns adaptive_avg_pool2d(x, 1) (global mean, NO pad)
    # when the kernel covers the whole plane.
    global_pool = ks0 >= h and ks1 >= w
    do_pad = auto_pad and not global_pool
    if do_pad:
        out_h, out_w = h, w
        pad_t = (h - oh) // 2
        pad_l = (w - ow) // 2
    else:
        out_h, out_w = oh, ow
        pad_t = pad_l = 0

    dtype = x.dtype
    itemsize = dtype.itemsize
    sub = 8 if itemsize == 4 else (16 if itemsize == 2 else 32)
    h_pad = _cdiv(h, sub) * sub          # sublane-align H -> (b,h,w)->(b*h,w) is a free view

    nc = n * c
    budget, vmem_limit = _vmem_budget()
    b, steps, nc_pad = _choose_grid(nc, h_pad, w, out_h, out_w, itemsize, budget)

    xf = x.reshape(nc, h, w)
    if nc_pad != nc or h_pad != h:
        # Padded planes/rows are dead weight multiplied by 0 in the masks -> exact.
        xf = jnp.pad(xf, ((0, nc_pad - nc), (0, h_pad - h), (0, 0)))

    fused = (out_w % 8 == 0)             # sublane-aligned -> single-matmul H pass
    ah_np, cw_np = _build_masks(h_pad, w, k1, k2, pad_t, pad_l, oh, ow, out_h, out_w)
    ah = jnp.asarray(ah_np.T if fused else ah_np, dtype=dtype)   # fused path wants Ah^T
    cw = jnp.asarray(cw_np, dtype=dtype)

    kernel = _make_kernel(b, h_pad, w, out_h, out_w, 1.0 / float(k1 * k2), dtype, fused)

    flops = 2 * nc_pad * (h_pad * w * out_w + out_w * h_pad * out_h)
    bytes_accessed = ((nc_pad * h_pad * w + nc_pad * out_h * out_w) * itemsize
                      + (ah.size + cw.size) * itemsize)

    out = pl.pallas_call(
        kernel,
        out_shape=jax.ShapeDtypeStruct((nc_pad, out_h, out_w), dtype),
        grid=(steps,),
        in_specs=[
            pl.BlockSpec((b, h_pad, w), lambda i: (i, 0, 0)),
            # Constant block index -> DMA'd once per core, stays resident in VMEM.
            pl.BlockSpec(ah.shape, lambda i: (0, 0)),
            pl.BlockSpec(cw.shape, lambda i: (0, 0)),
        ],
        out_specs=pl.BlockSpec((b, out_h, out_w), lambda i: (i, 0, 0)),
        compiler_params=pltpu.CompilerParams(
            dimension_semantics=("parallel",),          # independent planes; both v7x TCs
            vmem_limit_bytes=vmem_limit),
        cost_estimate=pl.CostEstimate(flops=flops, transcendentals=0,
                                      bytes_accessed=bytes_accessed),
    )(xf, ah, cw)

    if nc_pad != nc:
        out = out[:nc]
    return out.reshape(n, c, out_h, out_w)

    # TODO(synk): sliding-sum algorithm switch for k1+k2 << H+W (matmul path does
    # O(HW(H+W)) FLOPs vs O(HW(k1+k2))), lane-packing of planes when out_w < 128,
    # spatial tiling for planes too large for one VMEM block, the fast_imp=True
    # branch (strided cumsum + F.interpolate) and the dynamic kernel_size derivation
    # from base_size/train_size (config glue).


# --------------------------------------------------------------------------- reference
def avg_pool2d_ref(x, kernel_size, auto_pad=True):
    """Pure-JAX transcription of the PyTorch forward (fast_imp=False)."""
    n, c, h, w = x.shape
    k1 = min(h, kernel_size[0])
    k2 = min(w, kernel_size[1])
    s = jnp.cumsum(jnp.cumsum(x, axis=-1), axis=-2)
    s = jnp.pad(s, ((0, 0), (0, 0), (1, 0), (1, 0)))
    s1 = s[:, :, :-k1, :-k2]
    s2 = s[:, :, :-k1, k2:]
    s3 = s[:, :, k1:, :-k2]
    s4 = s[:, :, k1:, k2:]
    out = (s4 + s1 - s2 - s3) / (k1 * k2)
    if kernel_size[0] >= h and kernel_size[1] >= w:
        return out
    if auto_pad:
        _h, _w = out.shape[2:]
        out = jnp.pad(out, ((0, 0), (0, 0),
                            ((h - _h) // 2, (h - _h + 1) // 2),
                            ((w - _w) // 2, (w - _w + 1) // 2)), mode="edge")
    return out


if __name__ == "__main__":
    key = jax.random.PRNGKey(0)
    x = jax.random.normal(key, (2, 4, 16, 16), dtype=jnp.float32)

    # Box-filter + replicate-pad path (kernel < spatial), fused H-pass.
    kernel_size = (7, 7)
    out = jax.block_until_ready(avg_pool2d_pallas(x, kernel_size, auto_pad=True))
    ref = avg_pool2d_ref(x, kernel_size, auto_pad=True)
    assert out.shape == x.shape, (out.shape, x.shape)
    np.testing.assert_allclose(np.asarray(out), np.asarray(ref), rtol=1e-5, atol=1e-5)

    # Global-pool early-return path (kernel >= spatial -> (N, C, 1, 1) mean, no pad).
    out_g = jax.block_until_ready(avg_pool2d_pallas(x, (16, 16), auto_pad=True))
    ref_g = avg_pool2d_ref(x, (16, 16), auto_pad=True)
    np.testing.assert_allclose(np.asarray(out_g), np.asarray(ref_g), rtol=1e-5, atol=1e-5)

    print("KERNEL_OK")
</pallas_src>

<mosaic_0001>
module attributes {stable_mosaic.version = 11 : i64} {
  func.func @kernel(%arg0: i32, %arg1: memref<4x16x16xf32, #tpu.memory_space<vmem>>, %arg2: memref<16x16xf32, #tpu.memory_space<vmem>>, %arg3: memref<16x16xf32, #tpu.memory_space<vmem>>, %arg4: memref<4x16x16xf32, #tpu.memory_space<vmem>>) attributes {dimension_semantics = [#tpu.dimension_semantics<parallel>], iteration_bounds = array<i64: 2>, scalar_prefetch = 0 : i64, scratch_operands = 0 : i64, tpu.core_type = #tpu.core_type<tc>, window_params = [{transform_indices = @transform_0, window_bounds = array<i64: 4, 16, 16>}, {pipeline_mode = #tpu.pipeline_mode<synchronous>, transform_indices = @transform_1, window_bounds = array<i64: 16, 16>}, {pipeline_mode = #tpu.pipeline_mode<synchronous>, transform_indices = @transform_2, window_bounds = array<i64: 16, 16>}, {transform_indices = @transform_3, window_bounds = array<i64: 4, 16, 16>}]} {
    %c0 = arith.constant 0 : index
    %c0_0 = arith.constant 0 : index
    %c0_1 = arith.constant 0 : index
    %0 = vector.load %arg1[%c0, %c0_0, %c0_1] : memref<4x16x16xf32, #tpu.memory_space<vmem>>, vector<4x16x16xf32>
    %1 = vector.shape_cast %0 : vector<4x16x16xf32> to vector<64x16xf32>
    %c0_2 = arith.constant 0 : index
    %c0_3 = arith.constant 0 : index
    %2 = vector.load %arg3[%c0_2, %c0_3] : memref<16x16xf32, #tpu.memory_space<vmem>>, vector<16x16xf32>
    %cst = arith.constant dense<0.000000e+00> : vector<64x16xf32>
    %3 = tpu.matmul %1, %2, %cst {dimension_numbers = #tpu.dot_dimension_numbers<[1], [0], [0], [1], [0, 0, 1, 1], [], []>} : vector<64x16xf32>, vector<16x16xf32>, vector<64x16xf32> -> vector<64x16xf32>
    %4 = vector.shape_cast %3 : vector<64x16xf32> to vector<4x16x16xf32>
    %5 = tpu.transpose %4, [0, 2, 1] : vector<4x16x16xf32> -> vector<4x16x16xf32>
    %6 = vector.shape_cast %5 : vector<4x16x16xf32> to vector<64x16xf32>
    %c0_4 = arith.constant 0 : index
    %c0_5 = arith.constant 0 : index
    %7 = vector.load %arg2[%c0_4, %c0_5] : memref<16x16xf32, #tpu.memory_space<vmem>>, vector<16x16xf32>
    %cst_6 = arith.constant dense<0.000000e+00> : vector<64x16xf32>
    %8 = tpu.matmul %6, %7, %cst_6 {dimension_numbers = #tpu.dot_dimension_numbers<[1], [0], [0], [1], [0, 0, 1, 1], [], []>} : vector<64x16xf32>, vector<16x16xf32>, vector<64x16xf32> -> vector<64x16xf32>
    %cst_7 = arith.constant 0.0204081628 : f32
    %9 = vector.broadcast %cst_7 : f32 to vector<64x16xf32>
    %10 = arith.mulf %8, %9 : vector<64x16xf32>
    %11 = vector.shape_cast %10 : vector<64x16xf32> to vector<4x16x16xf32>
    %12 = tpu.transpose %11, [0, 2, 1] : vector<4x16x16xf32> -> vector<4x16x16xf32>
    %c0_8 = arith.constant 0 : index
    %c0_9 = arith.constant 0 : index
    %c0_10 = arith.constant 0 : index
    %13 = vector.load %arg4[%c0_8, %c0_9, %c0_10] : memref<4x16x16xf32, #tpu.memory_space<vmem>>, vector<4x16x16xf32>
    tpu.vector_store %arg4[%c0_8, %c0_9, %c0_10], %12 {strides = array<i32>} : memref<4x16x16xf32, #tpu.memory_space<vmem>>, vector<4x16x16xf32>,
    return
  }
  func.func @transform_0(%arg0: i32) -> (i32, i32, i32) {
    %c0_i32 = arith.constant 0 : i32
    %c0_i32_0 = arith.constant 0 : i32
    %c0_i32_1 = arith.constant 0 : i32
    return %arg0, %c0_i32, %c0_i32_0 : i32, i32, i32
  }
  func.func @transform_1(%arg0: i32) -> (i32, i32) {
    %c0_i32 = arith.constant 0 : i32
    %c0_i32_0 = arith.constant 0 : i32
    %c0_i32_1 = arith.constant 0 : i32
    return %c0_i32, %c0_i32_0 : i32, i32
  }
  func.func @transform_2(%arg0: i32) -> (i32, i32) {
    %c0_i32 = arith.constant 0 : i32
    %c0_i32_0 = arith.constant 0 : i32
    %c0_i32_1 = arith.constant 0 : i32
    return %c0_i32, %c0_i32_0 : i32, i32
  }
  func.func @transform_3(%arg0: i32) -> (i32, i32, i32) {
    %c0_i32 = arith.constant 0 : i32
    %c0_i32_0 = arith.constant 0 : i32
    %c0_i32_1 = arith.constant 0 : i32
    return %arg0, %c0_i32, %c0_i32_0 : i32, i32, i32
  }
}

</mosaic_0001>

<bundles_post_ra>
// kernel: tpu_custom_call.1
= control target key start
LH: loop header
LB: loop body
LE: loop exit
PB: predicated region body
PF: predicated region fallthrough
CT: control target
= control target key end

     0   :  { %8 = vsyncpa [#allocation3], 0  ;;  %s1233_s0 = inlined_call_operand.hbm [shape: f32[8,16,16], index: 0, kind: input, shape index: {}]   ;;  %s1234_s1 = inlined_call_operand.hbm [shape: f32[16,16], index: 1, kind: input, shape index: {}]   ;;  %s1235_s2 = inlined_call_operand.hbm [shape: f32[16,16], index: 2, kind: input, shape index: {}]   ;;  %s1236_s3 = inlined_call_operand.hbm [shape: f32[8,16,16], index: 3, kind: output, shape index: {}]  }
   0x1   :  { %10 = vsyncpa [#allocation3 + $0x1], 0 }
   0x2   :  { %11 = vsyncpa [#allocation6], 0 }
   0x3   :  { %12 = vsyncpa [#allocation4], 0 }
   0x4   :  { %14 = vsyncpa [#allocation4 + $0x1], 0  ;;  %s1055_s12 = smov 0   ;;  %s1057_s13 = smov 0  }
   0x5   :  { %s1059_s14 = smov 0   ;;  %s1061_s15 = smov 0  }
   0x6 LB: > { %s1076_s16 = sadd.s32 4294967295, %s1027_s15   ;;  %s751_s17 = sadd.s32 4294967294, %s1027_s15   ;;  %s1027_s15 = sphi %s1061_s15, %s1246_s15   ;;  %s1023_s14 = sphi %s1059_s14, %s1245_s14   ;;  %s1019_s13 = sphi %s1057_s13, %s1244_s13   ;;  %s1015_s12 = sphi %s1055_s12, %s1243_s12  }
   0x7   : > { %p40_p0 = scmp.ne.s32.totalorder %s1019_s13, %s1015_s12  ;;  %p41_p1 = scmp.eq.s32.totalorder %s1076_s16, 0 }
   0x8   : > { %p106_p2 = scmp.eq.s32.totalorder %s1076_s16, 1  ;;  %p112_p3 = scmp.eq.s32.totalorder %s751_s17, 1 }
   0x9   : > { %p1085_p4 = por %p41_p1, %p40_p0  ;;  %p752_p5 = scmp.ge.s32.totalorder %s1027_s15, 1 }
   0xa   : > { %p1090_p6 = por %p112_p3, %p40_p0  ;;  %p119_p7 = scmp.lt.s32.totalorder %s1027_s15, 3 }
   0xb   : > { %s130_s22 = sshll.u32 %s1234_s1, 4  ;;  %s1029_s24 = smov [#allocation5]   ;;  %s131_s22 = int_to_ptr.hbm [resolvable:$true] %s130_s22 }
   0xc   : > { %p1098_p8 = pnand %p752_p5, %p119_p7  ;;  %s132_s25 = sshll.u32 %s1029_s24, 4  ;;  %s133_s25 = int_to_ptr.vmem [resolvable:$true] %s132_s25 }
   0xd   : > { %s144_s28 = sshll.u32 %s1235_s2, 4  ;;  %s1030_s29 = smov 128   ;;  %s145_s28 = int_to_ptr.hbm [resolvable:$true] %s144_s28 }
   0xe   : > { %p807_p9 = pneg %p1098_p8  ;;  %s1031_s30 = smov 8  }
   0xf   : > { %s1032_s4 = smov [#allocation7]   ;;  %s1117_s6 = sadd.s32 1, %s1027_s15  }
  0x10   : > { %p808_p10 = pnand %p807_p9, %p41_p1  ;;  %s146_s5 = sshll.u32 %s1032_s4, 4  ;;  %s147_s5 = int_to_ptr.vmem [resolvable:$true] %s146_s5 }
  0x11   : > { %s27_s7 = sadd.s32 1, %s1023_s14  ;;  %s24_s8 = ssub.s32 %s1027_s15, %s1117_s6 }
  0x12   : > { %810 = dma.hbm_to_vmem [thread:$0]  (!%p808_p10), %s131_s22, 256, %s133_s25, [#allocation6], %s1030_s29, %s1030_s29, %s1031_s30  }
  0x13   : > { %813 = dma.hbm_to_vmem [thread:$0]  (!%p808_p10), %s145_s28, 256, %s147_s5, [#allocation6], %s1030_s29, %s1030_s29, %s1031_s30  }
  0x14   : > { %p34_p12 = scmp.ne.s32.totalorder %s1023_s14, %s1019_s13  ;;  %p25_p13 = scmp.eq.s32.totalorder %s24_s8, 0 }
  0x15   : > { %p35_p0 = scmp.eq.s32.totalorder %s1027_s15, 0  ;;  %p824_p5 = scmp.lt.s32.totalorder %s1027_s15, 2 }
  0x16   : > { %p1127_p3 = por %p106_p2, %p34_p12  ;;  %s160_s11 = sand.u32 1, %s1023_s14  }
  0x17   : > { %s1133_s10 = scalar_select %p25_p13, %s1023_s14, %s27_s7  }
  0x18   : > { %p36_p7 = por %p35_p0, %p34_p12  ;;  %s756_s17 = sshll.u32 %s160_s11, 6 }
  0x19   : > { %s788_s20 = sshll.u32 %s1027_s15, 6  ;;  %s164_s25 = scalar_lea.vmem [#allocation2], %s756_s17 }
  0x1a   : > { %s170_s24 = scalar_lea.hbm %s1233_s0, %s788_s20  ;;  %s173_s26 = sshll.u32 %s164_s25, 4  ;;  %s174_s26 = int_to_ptr.vmem [resolvable:$true] %s173_s26 }
  0x1b   : > { %s171_s27 = sshll.u32 %s170_s24, 4  ;;  %p1140_p2 = pnand %p824_p5, %p36_p7  ;;  %s172_s27 = int_to_ptr.hbm [resolvable:$true] %s171_s27 }
  0x1c   : > { %s161_s4 = scalar_lea.sflag [#allocation3], %s160_s11  ;;  %s927_s5 = sshra.s32 %s172_s27, 4  ;;  %s928_s5 = int_to_ptr.hbm [resolvable:$true] %s927_s5 }
  0x1d   : > { %s929_s7 = scalar_lea.hbm %s928_s5, 64  ;;  %p931_p10 = pneg %p1140_p2 }
  0x1e   : > { %p930_p9 = scmp.ne.s32.totalorder %s928_s5, %s929_s7  ;;  %s934_s20 = scalar_lea.hbm %s1233_s0, 128 }
  0x1f   : > { %p935_p0 = scmp.lt.s32.totalorder %s928_s5, %s1233_s0  ;;  %p936_p5 = scmp.lt.s32.totalorder %s934_s20, %s929_s7 }
  0x20   : > { %p932_p12 = pnand %p931_p10, %p930_p9 }
  0x21   : > { %p937_p7 = por %p936_p5, %p935_p0 }
  0x22   : > { %p933_p13 = pneg %p932_p12 }
  0x24   : > { %p938_p11 = pnand %p937_p7, %p933_p13 }
  0x26   : > { %941 = shalt.err (!%p938_p11)
}
  0x27   : > { %817 = dma.hbm_to_vmem [thread:$0]  (!%p1140_p2), %s172_s27, 1024, %s174_s26, %s161_s4, %s1030_s29, %s1030_s29, %s1031_s30  }
  0x28   : > { %185 = sbr.rel (%p1098_p8) target bundleno = 676 (0x2a4), region = 32  ;;  %s1160_s11 = sand.u32 (!%p1098_p8), 1, %s1019_s13  }
  0x29   : > { %s761_s24 = sshll.u32 (!%p1098_p8), %s1160_s11, 6  ;;  %s188_s25 = scalar_lea.sflag (!%p1098_p8), [#allocation3], %s1160_s11 }
  0x2a   : > { %s191_s5 = scalar_lea.vmem (!%p1098_p8), [#allocation2], %s761_s24 }
  0x2d   : > { %1002 = dma.done.wait (%p1085_p4), %s188_s25, 1024  }
  0x2e   : > { %1004 = vsyncadd (%p1085_p4), %s188_s25, 4294966272 }
  0x2f   : > { %1006 = dma.done.wait (%p41_p1), [#allocation6], 512  }
  0x30   : > { %1008 = vsyncadd (%p41_p1), [#allocation6], 4294966784  ;;  %v236_v0 = vld [vmem:[#allocation7 + $0x8] sm:$0xff]  ;;  %v235_v1 = vld [vmem:[#allocation7] sm:$0xff]  ;;  %vm237_vm0 = vcmask 130048   ;;  %s224_s18 = scalar_lea.vmem [#allocation8], %s761_s24 }
  0x31   : > { %791 = vmatpush.msra.mxu2 %v236_v0  ;;  %v231_v2 = vld [vmem:[%s191_s5 + $0x20] sm:$0xff]  ;;  %276 = vmatpush.msra.mxu0 %v236_v0  ;;  %v232_v4 = vld [vmem:[%s191_s5 + $0x28] sm:$0xff]  ;;  %v233_v6 = vld [vmem:[%s191_s5 + $0x30] sm:$0xff]  ;;  %s790_s23 = sshll.u32 %s1076_s16, 6  ;;  %s656_s27 = sshll.u32 %s224_s18, 4  ;;  %s657_s27 = int_to_ptr.vmem [resolvable:$true] %s656_s27 }
  0x32   : > { %v227_v3 = vld [vmem:[%s191_s5] sm:$0xff]  ;;  %v228_v5 = vld [vmem:[%s191_s5 + $0x8] sm:$0xff]  ;;  %v229_v7 = vld [vmem:[%s191_s5 + $0x10] sm:$0xff]  ;;  %s655_s26 = scalar_lea.hbm %s1236_s3, %s790_s23  ;;  %s643_s4 = scalar_lea.sflag [#allocation4], %s1160_s11 }
  0x33   : > { %792 = vmatpush.msra.mxu2 %v235_v1  ;;  %277 = vmatpush.msra.mxu0 %v235_v1  ;;  %v234_v8 = vld [vmem:[%s191_s5 + $0x38] sm:$0xff]  ;;  %v432_v10 = vld [vmem:[#allocation5 + $0x8] sm:$0xff]  ;;  %v431_v11 = vld [vmem:[#allocation5] sm:$0xff]  ;;  %s658_s28 = sshll.u32 %s655_s26, 4  ;;  %s977_s20 = scalar_lea.hbm %s1236_s3, 128  ;;  %s659_s28 = int_to_ptr.hbm [resolvable:$true] %s658_s28 }
  0x34   : > { %769 = vmatmul.msk.f32.vlgmr.msra.gmra.mxu2 %vm237_vm0, %v231_v2  ;;  %765 = vmatmul.msk.f32.vlgmr.msra.gmra.mxu0 %vm237_vm0, %v227_v3  ;;  %v230_v9 = vld [vmem:[%s191_s5 + $0x18] sm:$0xff]  ;;  %s971_s7 = sshra.s32 %s659_s28, 4  ;;  %s972_s7 = int_to_ptr.hbm [resolvable:$true] %s971_s7 }
  0x35   : > { %793 = vmatpush.msra.mxu3 %v432_v10  ;;  %471 = vmatpush.msra.mxu1 %v432_v10  ;;  %s973_s8 = scalar_lea.hbm %s972_s7, 64  ;;  %p978_p11 = scmp.lt.s32.totalorder %s972_s7, %s1236_s3 }
  0x36   : > { %p974_p1 = scmp.ne.s32.totalorder %s972_s7, %s973_s8  ;;  %p979_p2 = scmp.lt.s32.totalorder %s977_s20, %s973_s8 }
  0x37   : > { %794 = vmatpush.msra.mxu3 %v431_v11  ;;  %472 = vmatpush.msra.mxu1 %v431_v11 }
  0x38   : > { %p975_p4 = pnand %p974_p1, %p1127_p3  ;;  %p980_p9 = por %p979_p2, %p978_p11 }
  0x3a   : > { %p976_p8 = pneg %p975_p4 }
  0x3c   : > { %770 = vmatmul.msk.f32.gmra.mxu2 %vm237_vm0, %v232_v4  ;;  %766 = vmatmul.msk.f32.gmra.mxu0 %vm237_vm0, %v228_v5  ;;  %p981_p10 = pnand %p980_p9, %p976_p8 }
  0x44   : > { %771 = vmatmul.msk.f32.gmra.mxu2 %vm237_vm0, %v233_v6  ;;  %767 = vmatmul.msk.f32.gmra.mxu0 %vm237_vm0, %v229_v7 }
  0x4c   : > { %772 = vmatmul.msk.f32.gmra.mxu2 %vm237_vm0, %v234_v8  ;;  %768 = vmatmul.msk.f32.gmra.mxu0 %vm237_vm0, %v230_v9 }
  0xb1   : > { %v279_v12 = vpop.f32.mrf.mxu0 }
  0xb2   : > { %303 = vxpose.xlu1.b32.start [1/2] (short) (narrow) %v279_v12, 16 }
  0xb7   : > { %v291_v13 = vpop.f32.mrf.mxu2 }
  0xb8   : > { %367 = vxpose.xlu0.b32.start [1/2] (short) (narrow) %v291_v13, 16 }
  0xb9   : > { %v282_v14 = vpop.f32.mrf.mxu0 }
  0xba   : > { %304 = vxpose.xlu1.b32.end [2/2] (short) (narrow) %v282_v14, 16 }
  0xbf   : > { %v294_v15 = vpop.f32.mrf.mxu2 }
  0xc0   : > { %368 = vxpose.xlu0.b32.end [2/2] (short) (narrow) %v294_v15, 16 }
  0xc1   : > { %v285_v16 = vpop.f32.mrf.mxu0 }
  0xc7   : > { %v297_v17 = vpop.f32.mrf.mxu2 }
  0xc8   : > { %399 = vxpose.xlu2.b32.start [1/2] (short) (narrow) %v297_v17, 16  ;;  %335 = vxpose.xlu0.b32.start [1/2] (short) (narrow) %v285_v16, 16 }
  0xc9   : > { %v288_v18 = vpop.f32.mrf.mxu0 }
  0xcf   : > { %v300_v19 = vpop.f32.mrf.mxu2 }
  0xd0   : > { %400 = vxpose.xlu2.b32.end [2/2] (short) (narrow) %v300_v19, 16  ;;  %336 = vxpose.xlu0.b32.end [2/2] (short) (narrow) %v288_v18, 16 }
 0x156   : > { %v319_v20 = vpop.trf.xlu1 }
 0x157   : > { %773 = vmatmul.msk.f32.vlgmr.msra.gmra.mxu1 %vm237_vm0, %v319_v20 }
 0x15c   : > { %v383_v21 = vpop.trf.xlu0 }
 0x15d   : > { %777 = vmatmul.msk.f32.vlgmr.msra.gmra.mxu3 %vm237_vm0, %v383_v21 }
 0x15e   : > { %v320_v22 = vpop.trf.xlu1 }
 0x15f   : > { %774 = vmatmul.msk.f32.gmra.mxu1 %vm237_vm0, %v320_v22 }
 0x161   : > { %v415_v24 = vpop.trf.xlu2 }
 0x164   : > { %v384_v23 = vpop.trf.xlu0 }
 0x165   : > { %778 = vmatmul.msk.f32.gmra.mxu3 %vm237_vm0, %v384_v23 }
 0x169   : > { %v416_v26 = vpop.trf.xlu2 }
 0x16c   : > { %v351_v25 = vpop.trf.xlu0 }
 0x16d   : > { %779 = vmatmul.msk.f32.gmra.mxu3 %vm237_vm0, %v415_v24  ;;  %775 = vmatmul.msk.f32.gmra.mxu1 %vm237_vm0, %v351_v25 }
 0x174   : > { %v352_v27 = vpop.trf.xlu0 }
 0x175   : > { %780 = vmatmul.msk.f32.gmra.mxu3 %vm237_vm0, %v416_v26  ;;  %776 = vmatmul.msk.f32.gmra.mxu1 %vm237_vm0, %v352_v27 }
 0x1d4   : > { %v474_v28 = vpop.f32.mrf.mxu1 }
 0x1d5   : > { %v498_v29 = vmul.f32 0.020408163, %v474_v28 }
 0x1d7   : > { %506 = vxpose.xlu1.b32.start [1/2] (short) (narrow) %v498_v29, 16 }
 0x1dc   : > { %v477_v30 = vpop.f32.mrf.mxu1 }
 0x1dd   : > { %v499_v31 = vmul.f32 0.020408163, %v477_v30 }
 0x1df   : > { %507 = vxpose.xlu1.b32.end [2/2] (short) (narrow) %v499_v31, 16 }
 0x1e0   : > { %v486_v32 = vpop.f32.mrf.mxu3 }
 0x1e1   : > { %v502_v33 = vmul.f32 0.020408163, %v486_v32 }
 0x1e3   : > { %570 = vxpose.xlu0.b32.start [1/2] (short) (narrow) %v502_v33, 16 }
 0x1e8   : > { %v489_v34 = vpop.f32.mrf.mxu3 }
 0x1e9   : > { %v503_v35 = vmul.f32 0.020408163, %v489_v34 }
 0x1ea   : > { %v480_v36 = vpop.f32.mrf.mxu1 }
 0x1eb   : > { %571 = vxpose.xlu0.b32.end [2/2] (short) (narrow) %v503_v35, 16  ;;  %v500_v37 = vmul.f32 0.020408163, %v480_v36 }
 0x1ed   : > { %538 = vxpose.xlu2.b32.start [1/2] (short) (narrow) %v500_v37, 16 }
 0x1f0   : > { %v492_v38 = vpop.f32.mrf.mxu3 }
 0x1f1   : > { %v504_v39 = vmul.f32 0.020408163, %v492_v38 }
 0x1f2   : > { %v483_v40 = vpop.f32.mrf.mxu1 }
 0x1f3   : > { %602 = vxpose.xlu1.b32.start [1/2] (short) (narrow) %v504_v39, 16  ;;  %v501_v41 = vmul.f32 0.020408163, %v483_v40 }
 0x1f5   : > { %539 = vxpose.xlu2.b32.end [2/2] (short) (narrow) %v501_v41, 16 }
 0x1f8   : > { %v495_v42 = vpop.f32.mrf.mxu3 }
 0x1f9   : > { %v505_v43 = vmul.f32 0.020408163, %v495_v42 }
 0x1fb   : > { %603 = vxpose.xlu1.b32.end [2/2] (short) (narrow) %v505_v43, 16 }
 0x27b   : > { %v522_v44 = vpop.trf.xlu1 }
 0x27c   : > { %634 = vst.msk [vmem:[%s224_s18] sm:$0xff] %vm237_vm0, %v522_v44 }
 0x283   : > { %v523_v45 = vpop.trf.xlu1 }
 0x284   : > { %635 = vst.msk [vmem:[%s224_s18 + $0x8] sm:$0xff] %vm237_vm0, %v523_v45 }
 0x286   : > { %v554_v46 = vpop.trf.xlu2 }
 0x287   : > { %636 = vst.msk [vmem:[%s224_s18 + $0x10] sm:$0xff] %vm237_vm0, %v554_v46  ;;  %v586_v47 = vpop.trf.xlu0 }
 0x288   : > { %638 = vst.msk [vmem:[%s224_s18 + $0x20] sm:$0xff] %vm237_vm0, %v586_v47 }
 0x28e   : > { %v555_v48 = vpop.trf.xlu2 }
 0x28f   : > { %637 = vst.msk [vmem:[%s224_s18 + $0x18] sm:$0xff] %vm237_vm0, %v555_v48  ;;  %v587_v49 = vpop.trf.xlu0 }
 0x290   : > { %639 = vst.msk [vmem:[%s224_s18 + $0x28] sm:$0xff] %vm237_vm0, %v587_v49 }
 0x297   : > { %v618_v50 = vpop.trf.xlu1 }
 0x298   : > { %640 = vst.msk [vmem:[%s224_s18 + $0x30] sm:$0xff] %vm237_vm0, %v618_v50 }
 0x29f   : > { %v619_v51 = vpop.trf.xlu1 }
 0x2a0   : > { %641 = vst.msk [vmem:[%s224_s18 + $0x38] sm:$0xff] %vm237_vm0, %v619_v51 }
 0x2a1   : > { %984 = shalt.err (!%p981_p10)
}
 0x2a2   : > { %s1033_s11 = smov 128   ;;  %s1034_s24 = smov 8  }
 0x2a3   : > { %805 = dma.vmem_to_hbm [thread:$0]  (%p1127_p3), %s657_s27, 1024, %s659_s28, %s643_s4, %s1033_s11, %s1033_s11, %s1034_s24  }
 0x2a4 PF: > { %s673_s25 = sand.u32 1, %s1015_s12   ;;  %p1242_p12 = scmp.ge.s32.totalorder %s1027_s15, 2 }
 0x2a5   : > { %s674_s5 = scalar_lea.sflag [#allocation4], %s673_s25 }
 0x2a6   : > { %p819_p13 = pnand %p1242_p12, %p1090_p6 }
 0x2a8   : > { %p820_p0 = pneg %p819_p13 }
 0x2aa   : > { %1010 = dma.done.wait (%p820_p0), %s674_s5, 1024  }
 0x2ab   : > { %1012 = vsyncadd (%p820_p0), %s674_s5, 4294966272  ;;  %p17_p5 = scmp.ge.s32.totalorder %s1117_s6, 4   ;;  %s1243_s12 = smov %s1019_s13 }
 0x2ac   : > { %s1244_s13 = smov %s1023_s14  ;;  %s1245_s14 = smov %s1133_s10 }
 0x2ad   : > { %s1246_s15 = smov %s1117_s6  ;;  %19 = sbr.rel (!%p17_p5) target bundleno = 6 (0x6), region = 85 }
 0x2b2   :  { %680 = vsyncpa [#allocation3], 1 }
 0x2b3   :  { %682 = vsyncpa [#allocation3 + $0x1], 1 }
 0x2b4   :  { %683 = vsyncpa [#allocation6], 1 }
 0x2b5   :  { %684 = vsyncpa [#allocation4], 1 }
 0x2b6   :  { %686 = vsyncpa [#allocation4 + $0x1], 1 }

</bundles_post_ra>
